<compile_context>
chip_gen: v5e
topology: v5e:2x2
jax: 0.10.0
libtpu: 0.0.40
codegen_flags: <defaults>
</compile_context>

<pallas_src>
import math

import jax
import jax.numpy as jnp
from jax.experimental import pallas as pl
from jax.experimental.pallas import tpu as pltpu


def critic_kernel(xt_ref, w1_ref, b1_ref, w2_ref, b2_ref, o_ref):
    # Layer 1 (MXU): [H, S] @ [S, TM] -> [H, TM], f32 accumulate.
    h = jnp.dot(w1_ref[...], xt_ref[...], preferred_element_type=jnp.float32)
    # Bias (H, 1) broadcasts across lanes; tanh stays f32 (EUP slot, effectively free).
    h = jnp.tanh(h + b1_ref[...])
    # Layer 2: VPU multiply + sublane reduce instead of an M=1 MXU matmul -> (1, TM).
    v = jnp.sum(h * w2_ref[...], axis=0, keepdims=True) + b2_ref[...]
    o_ref[...] = v.astype(o_ref.dtype)


def critic_forward(x, w1, b1, w2, b2, *, block_b=1024, compute_dtype=jnp.float32):
    """Critic forward pass.

    x:  [B, state_dim] float32
    w1: [128, state_dim], b1: [128]   (PyTorch nn.Linear [out, in] layout)
    w2: [1, 128],          b2: [1]
    Returns [B, 1] float32  (== tanh(x @ w1.T + b1) @ w2.T + b2).
    """
    B, S = x.shape
    H = w1.shape[0]

    # Lane tile: multiple of 128, capped at block_b; pad batch up to a tile multiple.
    tm = min(block_b, pl.cdiv(B, 128) * 128)
    b_pad = pl.cdiv(B, tm) * tm

    # Wrapper-side layout plumbing: pad + transpose to feature-major, optional bf16 feed.
    xt = jnp.pad(x, ((0, b_pad - B), (0, 0))).T.astype(compute_dtype)   # (S, b_pad)
    w1c = w1.astype(compute_dtype)                                      # (H, S)
    b1c = b1.reshape(H, 1).astype(jnp.float32)
    w2c = w2.reshape(H, 1).astype(jnp.float32)
    b2c = b2.reshape(1, 1).astype(jnp.float32)

    out = pl.pallas_call(
        critic_kernel,
        out_shape=jax.ShapeDtypeStruct((1, b_pad), jnp.float32),
        grid_spec=pltpu.PrefetchScalarGridSpec(
            num_scalar_prefetch=0,
            grid=(b_pad // tm,),
            in_specs=[
                pl.BlockSpec((S, tm), lambda i: (0, i)),   # x tile streamed per grid step
                pl.BlockSpec((H, S), lambda i: (0, 0)),    # weights resident across tiles
                pl.BlockSpec((H, 1), lambda i: (0, 0)),
                pl.BlockSpec((H, 1), lambda i: (0, 0)),
                pl.BlockSpec((1, 1), lambda i: (0, 0)),
            ],
            out_specs=pl.BlockSpec((1, tm), lambda i: (0, i)),  # lane-dense output stores
        ),
        compiler_params=pltpu.CompilerParams(
            dimension_semantics=("parallel",),       # shards batch tiles across TCs on v7x
            vmem_limit_bytes=32 * 1024 * 1024,       # explicit; safe on v5e/v6e/v7x
        ),
    )(xt, w1c, b1c, w2c, b2c)

    return out[0, :B].reshape(B, 1)


def init_critic_params(key, state_dim, hidden=128):
    """PyTorch nn.Linear default init U(-1/sqrt(fan_in), 1/sqrt(fan_in)), [out, in] layout."""
    k1, k2, k3, k4 = jax.random.split(key, 4)
    bound1 = 1.0 / math.sqrt(state_dim)
    bound2 = 1.0 / math.sqrt(hidden)
    w1 = jax.random.uniform(k1, (hidden, state_dim), jnp.float32, -bound1, bound1)
    b1 = jax.random.uniform(k2, (hidden,), jnp.float32, -bound1, bound1)
    w2 = jax.random.uniform(k3, (1, hidden), jnp.float32, -bound2, bound2)
    b2 = jax.random.uniform(k4, (1,), jnp.float32, -bound2, bound2)
    return w1, b1, w2, b2


def critic_reference(x, w1, b1, w2, b2):
    h = jnp.tanh(x @ w1.T + b1)
    return h @ w2.T + b2


if __name__ == "__main__":
    key = jax.random.PRNGKey(0)
    k_params, k_x1, k_x2 = jax.random.split(key, 3)

    state_dim = 4   # e.g. CartPole observation dim
    w1, b1, w2, b2 = init_critic_params(k_params, state_dim)

    # Test 1: tiny batch, full-f32 path -> must match the reference tightly.
    x_small = jax.random.normal(k_x1, (8, state_dim), jnp.float32)
    out_small = jax.block_until_ready(
        critic_forward(x_small, w1, b1, w2, b2, compute_dtype=jnp.float32))
    ref_small = critic_reference(x_small, w1, b1, w2, b2)
    assert out_small.shape == (8, 1)
    assert jnp.allclose(out_small, ref_small, atol=1e-5, rtol=1e-5), \
        "Pallas f32 output mismatch vs reference"

    # Test 2: non-multiple-of-128 batch with a small tile -> exercises the batch grid,
    # padding, resident weights, and the bf16 bandwidth path.
    x_big = jax.random.normal(k_x2, (260, state_dim), jnp.float32)
    out_big = jax.block_until_ready(
        critic_forward(x_big, w1, b1, w2, b2, block_b=128, compute_dtype=jnp.bfloat16))
    ref_big = critic_reference(x_big, w1, b1, w2, b2)
    assert out_big.shape == (260, 1)
    assert jnp.allclose(out_big, ref_big, atol=5e-2, rtol=5e-2), \
        "Pallas bf16 output mismatch vs reference"

    print("KERNEL_OK")
</pallas_src>

<mosaic_0001>
module attributes {stable_mosaic.version = 11 : i64} {
  func.func @critic_kernel(%arg0: i32, %arg1: memref<4x128xf32, #tpu.memory_space<vmem>>, %arg2: memref<128x4xf32, #tpu.memory_space<vmem>>, %arg3: memref<128x1xf32, #tpu.memory_space<vmem>>, %arg4: memref<128x1xf32, #tpu.memory_space<vmem>>, %arg5: memref<1x1xf32, #tpu.memory_space<vmem>>, %arg6: memref<1x128xf32, #tpu.memory_space<vmem>>) attributes {dimension_semantics = [#tpu.dimension_semantics<parallel>], iteration_bounds = array<i64: 1>, scalar_prefetch = 0 : i64, scratch_operands = 0 : i64, tpu.core_type = #tpu.core_type<tc>, window_params = [{transform_indices = @transform_0, window_bounds = array<i64: 4, 128>}, {pipeline_mode = #tpu.pipeline_mode<synchronous>, transform_indices = @transform_1, window_bounds = array<i64: 128, 4>}, {pipeline_mode = #tpu.pipeline_mode<synchronous>, transform_indices = @transform_2, window_bounds = array<i64: 128, 1>}, {pipeline_mode = #tpu.pipeline_mode<synchronous>, transform_indices = @transform_3, window_bounds = array<i64: 128, 1>}, {pipeline_mode = #tpu.pipeline_mode<synchronous>, transform_indices = @transform_4, window_bounds = array<i64: 1, 1>}, {transform_indices = @transform_5, window_bounds = array<i64: 1, 128>}]} {
    %c0 = arith.constant 0 : index
    %c0_0 = arith.constant 0 : index
    %0 = vector.load %arg2[%c0, %c0_0] : memref<128x4xf32, #tpu.memory_space<vmem>>, vector<128x4xf32>
    %c0_1 = arith.constant 0 : index
    %c0_2 = arith.constant 0 : index
    %1 = vector.load %arg1[%c0_1, %c0_2] : memref<4x128xf32, #tpu.memory_space<vmem>>, vector<4x128xf32>
    %cst = arith.constant dense<0.000000e+00> : vector<128x128xf32>
    %2 = tpu.matmul %0, %1, %cst {dimension_numbers = #tpu.dot_dimension_numbers<[1], [0], [0], [1], [0, 0, 1, 1], [], []>} : vector<128x4xf32>, vector<4x128xf32>, vector<128x128xf32> -> vector<128x128xf32>
    %c0_3 = arith.constant 0 : index
    %c0_4 = arith.constant 0 : index
    %3 = vector.load %arg3[%c0_3, %c0_4] : memref<128x1xf32, #tpu.memory_space<vmem>>, vector<128x1xf32>
    %4 = vector.broadcast %3 : vector<128x1xf32> to vector<128x128xf32>
    %5 = arith.addf %2, %4 : vector<128x128xf32>
    %6 = math.tanh %5 : vector<128x128xf32>
    %c0_5 = arith.constant 0 : index
    %c0_6 = arith.constant 0 : index
    %7 = vector.load %arg4[%c0_5, %c0_6] : memref<128x1xf32, #tpu.memory_space<vmem>>, vector<128x1xf32>
    %8 = vector.broadcast %7 : vector<128x1xf32> to vector<128x128xf32>
    %9 = arith.mulf %6, %8 : vector<128x128xf32>
    %cst_7 = arith.constant dense<0.000000e+00> : vector<128xf32>
    %10 = vector.multi_reduction <add>, %9, %cst_7 [0] : vector<128x128xf32> to vector<128xf32>
    %11 = vector.shape_cast %10 : vector<128xf32> to vector<1x128xf32>
    %c0_8 = arith.constant 0 : index
    %c0_9 = arith.constant 0 : index
    %12 = vector.load %arg5[%c0_8, %c0_9] : memref<1x1xf32, #tpu.memory_space<vmem>>, vector<1x1xf32>
    %13 = vector.broadcast %12 : vector<1x1xf32> to vector<1x128xf32>
    %14 = arith.addf %11, %13 : vector<1x128xf32>
    %c0_10 = arith.constant 0 : index
    %c0_11 = arith.constant 0 : index
    %15 = vector.load %arg6[%c0_10, %c0_11] : memref<1x128xf32, #tpu.memory_space<vmem>>, vector<1x128xf32>
    tpu.vector_store %arg6[%c0_10, %c0_11], %14 {strides = array<i32>} : memref<1x128xf32, #tpu.memory_space<vmem>>, vector<1x128xf32>,
    return
  }
  func.func @transform_0(%arg0: i32) -> (i32, i32) {
    %c0_i32 = arith.constant 0 : i32
    %c0_i32_0 = arith.constant 0 : i32
    return %c0_i32, %arg0 : i32, i32
  }
  func.func @transform_1(%arg0: i32) -> (i32, i32) {
    %c0_i32 = arith.constant 0 : i32
    %c0_i32_0 = arith.constant 0 : i32
    %c0_i32_1 = arith.constant 0 : i32
    return %c0_i32, %c0_i32_0 : i32, i32
  }
  func.func @transform_2(%arg0: i32) -> (i32, i32) {
    %c0_i32 = arith.constant 0 : i32
    %c0_i32_0 = arith.constant 0 : i32
    %c0_i32_1 = arith.constant 0 : i32
    return %c0_i32, %c0_i32_0 : i32, i32
  }
  func.func @transform_3(%arg0: i32) -> (i32, i32) {
    %c0_i32 = arith.constant 0 : i32
    %c0_i32_0 = arith.constant 0 : i32
    %c0_i32_1 = arith.constant 0 : i32
    return %c0_i32, %c0_i32_0 : i32, i32
  }
  func.func @transform_4(%arg0: i32) -> (i32, i32) {
    %c0_i32 = arith.constant 0 : i32
    %c0_i32_0 = arith.constant 0 : i32
    %c0_i32_1 = arith.constant 0 : i32
    return %c0_i32, %c0_i32_0 : i32, i32
  }
  func.func @transform_5(%arg0: i32) -> (i32, i32) {
    %c0_i32 = arith.constant 0 : i32
    %c0_i32_0 = arith.constant 0 : i32
    return %c0_i32, %arg0 : i32, i32
  }
}

</mosaic_0001>

<bundles_post_ra>
// kernel: tpu_custom_call.1
= control target key start
LH: loop header
LB: loop body
LE: loop exit
PB: predicated region body
PF: predicated region fallthrough
CT: control target
= control target key end

     0   :  { %s727_s0 = inlined_call_operand.vmem [shape: f32[4,128], index: 0, kind: input, shape index: {}]   ;;  %s728_s1 = inlined_call_operand.vmem [shape: f32[128,4], index: 1, kind: input, shape index: {}]   ;;  %s729_s2 = inlined_call_operand.vmem [shape: f32[128,1], index: 2, kind: input, shape index: {}]   ;;  %s730_s3 = inlined_call_operand.vmem [shape: f32[128,1], index: 3, kind: input, shape index: {}]   ;;  %s731_s4 = inlined_call_operand.<no memory space> [shape: f32[1,1], index: 4, kind: input, shape index: {}]   ;;  %s732_s5 = inlined_call_operand.hbm [shape: f32[1,128], index: 5, kind: output, shape index: {}]  }
   0x1   :  { %v10_v0 = vstv %s731_s4 }
   0x2   :  { %11 = vst [vmem:[#allocation2] sm:$0x1] %v10_v0 }
   0x3   :  { %v39_v1 = vld [vmem:[%s727_s0] sm:$0xf]  ;;  %vm185_vm0 = vcmask 1043456   ;;  %v511_v2 = vmov 0   ;;  %v42_v4 = vld [vmem:[%s729_s2 + $0x10] sm:$0xff]  ;;  %vm136_vm1 = vcmask 31744  }
   0x4   :  { %452 = vset.pattern.permute.xlu2 %v511_v2  ;;  %451 = vset.pattern.permute.xlu1 %v511_v2  ;;  %v44_v3 = vld [vmem:[%s729_s2 + $0x20] sm:$0xff]  ;;  %v45_v10 = vld [vmem:[%s729_s2 + $0x28] sm:$0xff]  ;;  %v43_v11 = vld [vmem:[%s729_s2 + $0x18] sm:$0xff] }
   0x5   :  { %450 = vset.pattern.permute.xlu0 %v511_v2  ;;  %428 = vmatpush.msk.msra.mxu0 %vm185_vm0, %v39_v1  ;;  %v40_v5 = vld [vmem:[%s729_s2] sm:$0xff]  ;;  %v41_v12 = vld [vmem:[%s729_s2 + $0x8] sm:$0xff] }
   0x6   :  { %445 = vmatpush.msk.msra.mxu1 %vm185_vm0, %v39_v1  ;;  %446 = vmatpush.msk.msra.mxu2 %vm185_vm0, %v39_v1  ;;  %v23_v6 = vld [vmem:[%s728_s1] sm:$0xff]  ;;  %v24_v13 = vld [vmem:[%s728_s1 + $0x8] sm:$0xff] }
   0x7   :  { %v27_v7 = vld [vmem:[%s728_s1 + $0x20] sm:$0xff]  ;;  %447 = vmatpush.msk.msra.mxu3 %vm185_vm0, %v39_v1  ;;  %78 = vperm.xlu2 %452, %v44_v3   ;;  %v28_v14 = vld [vmem:[%s728_s1 + $0x28] sm:$0xff] }
   0x8   :  { %v31_v8 = vld [vmem:[%s728_s1 + $0x40] sm:$0xff]  ;;  %68 = vperm.xlu1 %451, %v42_v4   ;;  %58 = vperm.xlu0 %450, %v40_v5  }
   0x9   :  { %v35_v9 = vld [vmem:[%s728_s1 + $0x60] sm:$0xff]  ;;  %429 = vmatmul.msk.f32.vlgmr.msra.gmra.mxu0 %vm136_vm1, %v23_v6  ;;  %433 = vmatmul.msk.f32.vlgmr.msra.gmra.mxu1 %vm136_vm1, %v27_v7 }
   0xa   :  { %437 = vmatmul.msk.f32.vlgmr.msra.gmra.mxu2 %vm136_vm1, %v31_v8  ;;  %441 = vmatmul.msk.f32.vlgmr.msra.gmra.mxu3 %vm136_vm1, %v35_v9 }
   0xb   :  { %12 = vsyncpa [#allocation4], 0  ;;  %v32_v15 = vld [vmem:[%s728_s1 + $0x48] sm:$0xff]  ;;  %v48_v17 = vld [vmem:[%s729_s2 + $0x40] sm:$0xff]  ;;  %s419_s10 = sshll.u32 %s732_s5, 4  ;;  %s420_s10 = int_to_ptr.hbm [resolvable:$true] %s419_s10 }
   0xc   :  { %v36_v16 = vld [vmem:[%s728_s1 + $0x68] sm:$0xff]  ;;  %v47_v18 = vld [vmem:[%s729_s2 + $0x38] sm:$0xff]  ;;  %v46_v19 = vld [vmem:[%s729_s2 + $0x30] sm:$0xff] }
   0xd   :  { %v25_v20 = vld [vmem:[%s728_s1 + $0x10] sm:$0xff]  ;;  %v51_v24 = vld [vmem:[%s729_s2 + $0x58] sm:$0xff]  ;;  %v49_v26 = vld [vmem:[%s729_s2 + $0x48] sm:$0xff] }
   0xe   :  { %v29_v21 = vld [vmem:[%s728_s1 + $0x30] sm:$0xff]  ;;  %v26_v27 = vld [vmem:[%s728_s1 + $0x18] sm:$0xff]  ;;  %v53_v32 = vld [vmem:[%s729_s2 + $0x68] sm:$0xff] }
   0xf   :  { %83 = vperm.xlu2 %452, %v45_v10   ;;  %v33_v22 = vld [vmem:[%s728_s1 + $0x50] sm:$0xff]  ;;  %v30_v28 = vld [vmem:[%s728_s1 + $0x38] sm:$0xff]  ;;  %v52_v33 = vld [vmem:[%s729_s2 + $0x60] sm:$0xff] }
  0x10   :  { %73 = vperm.xlu1 %451, %v43_v11   ;;  %63 = vperm.xlu0 %450, %v41_v12   ;;  %v37_v23 = vld [vmem:[%s728_s1 + $0x70] sm:$0xff]  ;;  %v34_v29 = vld [vmem:[%s728_s1 + $0x58] sm:$0xff]  ;;  %v271_v34 = vld [vmem:[%s730_s3 + $0x8] sm:$0xff] }
  0x11   :  { %430 = vmatmul.msk.f32.gmra.mxu0 %vm136_vm1, %v24_v13  ;;  %434 = vmatmul.msk.f32.gmra.mxu1 %vm136_vm1, %v28_v14  ;;  %v50_v25 = vld [vmem:[%s729_s2 + $0x50] sm:$0xff]  ;;  %v38_v30 = vld [vmem:[%s728_s1 + $0x78] sm:$0xff]  ;;  %v270_v35 = vld [vmem:[%s730_s3] sm:$0xff] }
  0x12   :  { %438 = vmatmul.msk.f32.gmra.mxu2 %vm136_vm1, %v32_v15  ;;  %442 = vmatmul.msk.f32.gmra.mxu3 %vm136_vm1, %v36_v16  ;;  %v54_v31 = vld [vmem:[%s729_s2 + $0x70] sm:$0xff]  ;;  %v55_v36 = vld [vmem:[%s729_s2 + $0x78] sm:$0xff]  ;;  %v274_v37 = vld [vmem:[%s730_s3 + $0x20] sm:$0xff] }
  0x13   :  { %v273_v38 = vld [vmem:[%s730_s3 + $0x18] sm:$0xff]  ;;  %v272_v39 = vld [vmem:[%s730_s3 + $0x10] sm:$0xff]  ;;  %v275_v42 = vld [vmem:[%s730_s3 + $0x28] sm:$0xff] }
  0x14   :  { %v277_v40 = vld [vmem:[%s730_s3 + $0x38] sm:$0xff]  ;;  %v276_v41 = vld [vmem:[%s730_s3 + $0x30] sm:$0xff]  ;;  %v279_v44 = vld [vmem:[%s730_s3 + $0x48] sm:$0xff] }
  0x15   :  { %v280_v43 = vld [vmem:[%s730_s3 + $0x50] sm:$0xff]  ;;  %v278_v45 = vld [vmem:[%s730_s3 + $0x40] sm:$0xff]  ;;  %v283_v46 = vld [vmem:[%s730_s3 + $0x68] sm:$0xff] }
  0x16   :  { %v282_v47 = vld [vmem:[%s730_s3 + $0x60] sm:$0xff]  ;;  %v281_v48 = vld [vmem:[%s730_s3 + $0x58] sm:$0xff]  ;;  %v284_v51 = vld [vmem:[%s730_s3 + $0x70] sm:$0xff] }
  0x17   :  { %98 = vperm.xlu2 %452, %v48_v17   ;;  %v403_v49 = vld [vmem:[#allocation2] sm:$0x1]  ;;  %v285_v50 = vld [vmem:[%s730_s3 + $0x78] sm:$0xff]  ;;  %s512_s3 = smov [#allocation3]  }
  0x18   :  { %93 = vperm.xlu1 %451, %v47_v18   ;;  %88 = vperm.xlu0 %450, %v46_v19   ;;  %s417_s7 = sshll.u32 %s512_s3, 4  ;;  %s418_s7 = int_to_ptr.vmem [resolvable:$true] %s417_s7 }
  0x19   :  { %431 = vmatmul.msk.f32.gmra.mxu0 %vm136_vm1, %v25_v20  ;;  %435 = vmatmul.msk.f32.gmra.mxu1 %vm136_vm1, %v29_v21 }
  0x1a   :  { %439 = vmatmul.msk.f32.gmra.mxu2 %vm136_vm1, %v33_v22  ;;  %443 = vmatmul.msk.f32.gmra.mxu3 %vm136_vm1, %v37_v23 }
  0x1f   :  { %113 = vperm.xlu2 %452, %v51_v24  }
  0x20   :  { %108 = vperm.xlu1 %451, %v50_v25   ;;  %103 = vperm.xlu0 %450, %v49_v26  }
  0x21   :  { %432 = vmatmul.msk.f32.gmra.mxu0 %vm136_vm1, %v26_v27  ;;  %436 = vmatmul.msk.f32.gmra.mxu1 %vm136_vm1, %v30_v28 }
  0x22   :  { %440 = vmatmul.msk.f32.gmra.mxu2 %vm136_vm1, %v34_v29  ;;  %444 = vmatmul.msk.f32.gmra.mxu3 %vm136_vm1, %v38_v30 }
  0x27   :  { %128 = vperm.xlu2 %452, %v54_v31  }
  0x28   :  { %123 = vperm.xlu1 %451, %v53_v32   ;;  %118 = vperm.xlu0 %450, %v52_v33  }
  0x2f   :  { %293 = vperm.xlu2 %452, %v271_v34  }
  0x30   :  { %288 = vperm.xlu1 %451, %v270_v35   ;;  %133 = vperm.xlu0 %450, %v55_v36  }
  0x37   :  { %308 = vperm.xlu2 %452, %v274_v37  }
  0x38   :  { %303 = vperm.xlu1 %451, %v273_v38   ;;  %298 = vperm.xlu0 %450, %v272_v39  }
  0x3f   :  { %323 = vperm.xlu2 %452, %v277_v40  }
  0x40   :  { %318 = vperm.xlu1 %451, %v276_v41   ;;  %313 = vperm.xlu0 %450, %v275_v42  }
  0x47   :  { %338 = vperm.xlu2 %452, %v280_v43  }
  0x48   :  { %333 = vperm.xlu1 %451, %v279_v44   ;;  %328 = vperm.xlu0 %450, %v278_v45  }
  0x4f   :  { %353 = vperm.xlu2 %452, %v283_v46  }
  0x50   :  { %348 = vperm.xlu1 %451, %v282_v47   ;;  %343 = vperm.xlu0 %450, %v281_v48  }
  0x57   :  { %406 = vperm.xlu2 %452, %v403_v49  }
  0x58   :  { %363 = vperm.xlu1 %451, %v285_v50   ;;  %358 = vperm.xlu0 %450, %v284_v51  }
  0x61   :  { %v79_v52 = vpop.permute.xlu2 %78 }
  0x69   :  { %v84_v53 = vpop.permute.xlu2 %83 }
  0x71   :  { %v99_v56 = vpop.permute.xlu2 %98 }
  0x79   :  { %v709_v60 = vpop.permute.xlu2 %113 }
  0x7a   :  { %v69_v54 = vpop.permute.xlu1 %68  ;;  %v59_v55 = vpop.permute.xlu0 %58 }
  0x81   :  { %v711_v3 = vpop.permute.xlu2 %128 }
  0x82   :  { %v74_v57 = vpop.permute.xlu1 %73  ;;  %v64_v58 = vpop.permute.xlu0 %63 }
  0x86   :  { %v206_v59 = vpop.f32.mrf.mxu0  ;;  %v218_v63 = vpop.f32.mrf.mxu1 }
  0x87   :  { %v207_v9 = vadd.f32 %v206_v59, %v59_v55  ;;  %v219_v22 = vadd.f32 %v218_v63, %v79_v52 }
  0x89   :  { %v294_v11 = vpop.permute.xlu2 %293  ;;  %453 = vtanh.f32 %v207_v9 }
  0x8a   :  { %v94_v61 = vpop.permute.xlu1 %93  ;;  %v89_v62 = vpop.permute.xlu0 %88 }
  0x8d   :  { %v230_v6 = vpop.f32.mrf.mxu2  ;;  %v242_v15 = vpop.f32.mrf.mxu3 }
  0x8e   :  { %v209_v0 = vpop.f32.mrf.mxu0  ;;  %v221_v4 = vpop.f32.mrf.mxu1  ;;  %v231_v42 = vadd.f32 %v230_v6, %v99_v56 }
  0x8f   :  { %v210_v10 = vadd.f32 %v209_v0, %v64_v58  ;;  %v454_v20 = vpop.eup %453  ;;  %v222_v25 = vadd.f32 %v221_v4, %v84_v53 }
  0x91   :  { %455 = vtanh.f32 %v210_v10  ;;  %v309_v23 = vpop.permute.xlu2 %308 }
  0x92   :  { %v109_v1 = vpop.permute.xlu1 %108  ;;  %v104_v2 = vpop.permute.xlu0 %103 }
  0x95   :  { %v233_v16 = vpop.f32.mrf.mxu2  ;;  %v245_v32 = vpop.f32.mrf.mxu3 }
  0x96   :  { %v212_v5 = vpop.f32.mrf.mxu0  ;;  %v224_v12 = vpop.f32.mrf.mxu1  ;;  %v234_v46 = vadd.f32 %v233_v16, %v104_v2 }
  0x97   :  { %v213_v14 = vadd.f32 %v212_v5, %v69_v54  ;;  %v456_v21 = vpop.eup %455  ;;  %v225_v29 = vadd.f32 %v224_v12, %v89_v62 }
  0x98   :  { %v367_v27 = vmul.f32 %v456_v21, %v294_v11 }
  0x99   :  { %457 = vtanh.f32 %v213_v14  ;;  %v324_v44 = vpop.permute.xlu2 %323 }
  0x9a   :  { %v713_v7 = vpop.permute.xlu1 %123  ;;  %v715_v8 = vpop.permute.xlu0 %118 }
  0x9b   :  { %v243_v63 = vadd.f32 %v242_v15, %v715_v8  ;;  %v246_v12 = vadd.f32 %v245_v32, %v713_v7 }
  0x9d   :  { %v236_v33 = vpop.f32.mrf.mxu2  ;;  %v248_v53 = vpop.f32.mrf.mxu3 }
  0x9e   :  { %v215_v13 = vpop.f32.mrf.mxu0  ;;  %v227_v26 = vpop.f32.mrf.mxu1  ;;  %v237_v52 = vadd.f32 %v236_v33, %v109_v1 }
  0x9f   :  { %v216_v17 = vadd.f32 %v215_v13, %v74_v57  ;;  %v458_v28 = vpop.eup %457  ;;  %v228_v37 = vadd.f32 %v227_v26, %v94_v61 }
  0xa1   :  { %459 = vtanh.f32 %v216_v17  ;;  %v339_v1 = vpop.permute.xlu2 %338 }
  0xa2   :  { %v289_v18 = vpop.permute.xlu1 %288  ;;  %v717_v19 = vpop.permute.xlu0 %133  ;;  %461 = vtanh.f32 %v219_v22 }
  0xa3   :  { %v366_v24 = vmul.f32 %v454_v20, %v289_v18  ;;  %463 = vtanh.f32 %v222_v25 }
  0xa4   :  { %465 = vtanh.f32 %v225_v29 }
  0xa5   :  { %v382_v34 = vadd.f32 %v367_v27, %v366_v24  ;;  %467 = vtanh.f32 %v228_v37  ;;  %v239_v54 = vpop.f32.mrf.mxu2  ;;  %v251_v13 = vpop.f32.mrf.mxu3 }
  0xa6   :  { %469 = vtanh.f32 %v231_v42  ;;  %v240_v56 = vadd.f32 %v239_v54, %v709_v60  ;;  %v249_v60 = vadd.f32 %v248_v53, %v711_v3  ;;  %v252_v8 = vadd.f32 %v251_v13, %v717_v19 }
  0xa7   :  { %v460_v36 = vpop.eup %459  ;;  %471 = vtanh.f32 %v234_v46 }
  0xa8   :  { %v462_v41 = vpop.eup %461  ;;  %473 = vtanh.f32 %v237_v52 }
  0xa9   :  { %v370_v43 = vmul.f32 %v462_v41, %v309_v23  ;;  %v464_v45 = vpop.eup %463  ;;  %475 = vtanh.f32 %v240_v56  ;;  %v354_v7 = vpop.permute.xlu2 %353 }
  0xaa   :  { %v304_v30 = vpop.permute.xlu1 %303  ;;  %v299_v31 = vpop.permute.xlu0 %298  ;;  %477 = vtanh.f32 %v243_v63 }
  0xab   :  { %v368_v35 = vmul.f32 %v458_v28, %v299_v31  ;;  %v369_v38 = vmul.f32 %v460_v36, %v304_v30  ;;  %v466_v51 = vpop.eup %465  ;;  %479 = vtanh.f32 %v246_v12 }
  0xac   :  { %v468_v58 = vpop.eup %467  ;;  %481 = vtanh.f32 %v249_v60 }
  0xad   :  { %v383_v39 = vadd.f32 %v382_v34, %v368_v35  ;;  %v373_v61 = vmul.f32 %v468_v58, %v324_v44  ;;  %v470_v62 = vpop.eup %469  ;;  %483 = vtanh.f32 %v252_v8 }
  0xae   :  { %v472_v6 = vpop.eup %471 }
  0xaf   :  { %v384_v40 = vadd.f32 %v383_v39, %v369_v38  ;;  %v474_v11 = vpop.eup %473 }
  0xb0   :  { %v376_v16 = vmul.f32 %v474_v11, %v339_v1  ;;  %v476_v17 = vpop.eup %475 }
  0xb1   :  { %v385_v50 = vadd.f32 %v384_v40, %v370_v43  ;;  %v478_v22 = vpop.eup %477  ;;  %v407_v39 = vpop.permute.xlu2 %406 }
  0xb2   :  { %v319_v47 = vpop.permute.xlu1 %318  ;;  %v314_v48 = vpop.permute.xlu0 %313  ;;  %v409_v41 = vperm.slane %v407_v39, 0 }
  0xb3   :  { %v371_v49 = vmul.f32 %v464_v45, %v314_v48  ;;  %v372_v55 = vmul.f32 %v466_v51, %v319_v47  ;;  %v480_v26 = vpop.eup %479 }
  0xb4   :  { %v379_v27 = vmul.f32 %v480_v26, %v354_v7  ;;  %v482_v28 = vpop.eup %481 }
  0xb5   :  { %v386_v57 = vadd.f32 %v385_v50, %v371_v49  ;;  %v484_v32 = vpop.eup %483 }
  0xb7   :  { %v387_v59 = vadd.f32 %v386_v57, %v372_v55 }
  0xb9   :  { %v388_v5 = vadd.f32 %v387_v59, %v373_v61 }
  0xba   :  { %v334_v0 = vpop.permute.xlu1 %333  ;;  %v329_v2 = vpop.permute.xlu0 %328 }
  0xbb   :  { %v374_v4 = vmul.f32 %v470_v62, %v329_v2  ;;  %v375_v9 = vmul.f32 %v472_v6, %v334_v0 }
  0xbd   :  { %v389_v10 = vadd.f32 %v388_v5, %v374_v4 }
  0xbf   :  { %v390_v14 = vadd.f32 %v389_v10, %v375_v9 }
  0xc1   :  { %v391_v21 = vadd.f32 %v390_v14, %v376_v16 }
  0xc2   :  { %v349_v15 = vpop.permute.xlu1 %348  ;;  %v344_v18 = vpop.permute.xlu0 %343 }
  0xc3   :  { %v377_v20 = vmul.f32 %v476_v17, %v344_v18  ;;  %v378_v23 = vmul.f32 %v478_v22, %v349_v15 }
  0xc5   :  { %v392_v24 = vadd.f32 %v391_v21, %v377_v20 }
  0xc7   :  { %v393_v25 = vadd.f32 %v392_v24, %v378_v23 }
  0xc9   :  { %v394_v31 = vadd.f32 %v393_v25, %v379_v27 }
  0xca   :  { %v364_v3 = vpop.permute.xlu1 %363  ;;  %v359_v29 = vpop.permute.xlu0 %358 }
  0xcb   :  { %v380_v30 = vmul.f32 %v482_v28, %v359_v29  ;;  %v381_v19 = vmul.f32 %v484_v32, %v364_v3 }
  0xcd   :  { %v395_v33 = vadd.f32 %v394_v31, %v380_v30 }
  0xcf   :  { %v396_v34 = vadd.f32 %v395_v33, %v381_v19 }
  0xd1   :  { %v397_v35 = vrot.slane %v396_v34, 4 }
  0xd3   :  { %v398_v36 = vadd.f32 %v397_v35, %v396_v34 }
  0xd5   :  { %v399_v37 = vrot.slane %v398_v36, 2 }
  0xd7   :  { %v400_v38 = vadd.f32 %v399_v37, %v398_v36 }
  0xd9   :  { %v401_v40 = vrot.slane %v400_v38, 1 }
  0xdb   :  { %v402_v42 = vadd.f32 %v401_v40, %v400_v38 }
  0xdd   :  { %v410_v43 = vadd.f32 %v409_v41, %v402_v42 }
  0xdf   :  { %411 = vst [vmem:[#allocation3] sm:$0x1] %v410_v43 }
  0xe0   :  { %422 = dma.vmem_to_hbm [thread:$0]  %s418_s7, 16, %s420_s10, [#allocation4]  }
  0xe1   :  { %509 = dma.done.wait [#allocation4], 16  }
  0xe2   :  { %510 = vsyncadd [#allocation4], 4294967280 }
  0xe3   :  { %427 = vsyncpa [#allocation4], 1 }

</bundles_post_ra>
